<compile_context>
chip_gen: v6e
topology: v6e:2x2x1
jax: 0.10.0
libtpu: 0.0.40
codegen_flags: <defaults>
</compile_context>

<pallas_src>
import functools
import math

import jax
import jax.numpy as jnp
from jax.experimental import pallas as pl
from jax.experimental.pallas import tpu as pltpu

BN_EPS = 1e-5


def _round_up(x, m):
    return (x + m - 1) // m * m


# ---------------------------------------------------------------------------
# Fused matmul (+ per-column bias) (+ residual) (+ ReLU) Pallas kernels.
# BN scale is pre-folded into B, BN shift is the bias.
# ---------------------------------------------------------------------------
def _mm_kernel_nores(apply_relu, a_ref, b_ref, c_ref, o_ref, acc_ref):
    @pl.when(pl.program_id(2) == 0)
    def _():
        acc_ref[...] = jnp.zeros_like(acc_ref)

    acc_ref[...] += jnp.dot(a_ref[...], b_ref[...],
                            preferred_element_type=jnp.float32)

    @pl.when(pl.program_id(2) == pl.num_programs(2) - 1)
    def _():
        y = acc_ref[...] + c_ref[...]
        if apply_relu:
            y = jnp.maximum(y, 0.0)
        o_ref[...] = y.astype(o_ref.dtype)


def _mm_kernel_res(apply_relu, a_ref, b_ref, c_ref, r_ref, o_ref, acc_ref):
    @pl.when(pl.program_id(2) == 0)
    def _():
        acc_ref[...] = jnp.zeros_like(acc_ref)

    acc_ref[...] += jnp.dot(a_ref[...], b_ref[...],
                            preferred_element_type=jnp.float32)

    @pl.when(pl.program_id(2) == pl.num_programs(2) - 1)
    def _():
        y = acc_ref[...] + c_ref[...] + r_ref[...].astype(jnp.float32)
        if apply_relu:
            y = jnp.maximum(y, 0.0)
        o_ref[...] = y.astype(o_ref.dtype)


def matmul_bias(a, b, bias, residual=None, relu=False,
                out_dtype=jnp.bfloat16):
    """out = maybe_relu(a @ b + bias[col] (+ residual)).

    a: (M, K), b: (K, N) with BN scale already folded in, bias: (N,).
    Operands are cast to bf16 (MXU-native); accumulation is f32.
    """
    M, K = a.shape
    K2, N = b.shape
    assert K2 == K

    # Tile selection: big lane-dense tiles, capped so padding stays small.
    tm = min(256, _round_up(M, 16))
    tn = min(256, _round_up(N, 128))
    tk = min(512, _round_up(K, 128))
    Mp, Np, Kp = _round_up(M, tm), _round_up(N, tn), _round_up(K, tk)

    a_p = a.astype(jnp.bfloat16)
    if (Mp, Kp) != (M, K):
        a_p = jnp.pad(a_p, ((0, Mp - M), (0, Kp - K)))
    b_p = b.astype(jnp.bfloat16)
    if (Kp, Np) != (K, N):
        b_p = jnp.pad(b_p, ((0, Kp - K), (0, Np - N)))
    c_p = bias.astype(jnp.float32).reshape(1, N)
    if Np != N:
        c_p = jnp.pad(c_p, ((0, 0), (0, Np - N)))

    grid = (Mp // tm, Np // tn, Kp // tk)
    out_bytes = Mp * Np * jnp.dtype(out_dtype).itemsize
    cost = pl.CostEstimate(
        flops=2 * M * N * K,
        transcendentals=0,
        bytes_accessed=a_p.size * 2 + b_p.size * 2 + out_bytes,
    )

    in_specs = [
        pl.BlockSpec((tm, tk), lambda i, j, k: (i, k)),
        pl.BlockSpec((tk, tn), lambda i, j, k: (k, j)),
        pl.BlockSpec((1, tn), lambda i, j, k: (0, j)),
    ]
    out_spec = pl.BlockSpec((tm, tn), lambda i, j, k: (i, j))
    scratch = [pltpu.VMEM((tm, tn), jnp.float32)]
    cparams = pltpu.CompilerParams(
        dimension_semantics=("parallel", "parallel", "arbitrary"))

    if residual is None:
        kernel = functools.partial(_mm_kernel_nores, bool(relu))
        out = pl.pallas_call(
            kernel,
            out_shape=jax.ShapeDtypeStruct((Mp, Np), out_dtype),
            grid_spec=pltpu.PrefetchScalarGridSpec(
                num_scalar_prefetch=0, grid=grid,
                in_specs=in_specs, out_specs=out_spec,
                scratch_shapes=scratch),
            compiler_params=cparams,
            cost_estimate=cost,
        )(a_p, b_p, c_p)
    else:
        r_p = residual.astype(jnp.bfloat16)
        if (Mp, Np) != (M, N):
            r_p = jnp.pad(r_p, ((0, Mp - M), (0, Np - N)))
        kernel = functools.partial(_mm_kernel_res, bool(relu))
        out = pl.pallas_call(
            kernel,
            out_shape=jax.ShapeDtypeStruct((Mp, Np), out_dtype),
            grid_spec=pltpu.PrefetchScalarGridSpec(
                num_scalar_prefetch=0, grid=grid,
                in_specs=in_specs + [pl.BlockSpec((tm, tn),
                                                  lambda i, j, k: (i, j))],
                out_specs=out_spec,
                scratch_shapes=scratch),
            compiler_params=cparams,
            cost_estimate=cost,
        )(a_p, b_p, c_p, r_p)

    if (Mp, Np) != (M, N):
        out = out[:M, :N]
    return out


# ---------------------------------------------------------------------------
# im2col glue (plain JAX) + fused conv/bn(/residual)(/relu) wrapper.
# ---------------------------------------------------------------------------
def im2col_3d(x, ksize, stride, padding):
    # x: (N, D, H, W, C) channels-last
    N, D, H, W, C = x.shape
    kd, kh, kw = ksize
    sd, sh, sw = stride
    pd, ph, pw = padding
    Do = (D + 2 * pd - kd) // sd + 1
    Ho = (H + 2 * ph - kh) // sh + 1
    Wo = (W + 2 * pw - kw) // sw + 1
    xp = jnp.pad(x, ((0, 0), (pd, pd), (ph, ph), (pw, pw), (0, 0)))
    cols = []
    for dz in range(kd):
        for dy in range(kh):
            for dx in range(kw):
                cols.append(xp[:, dz:dz + sd * Do:sd,
                               dy:dy + sh * Ho:sh,
                               dx:dx + sw * Wo:sw, :])
    col = jnp.stack(cols, axis=4)  # (N, Do, Ho, Wo, kd*kh*kw, C)
    return col.reshape(N * Do * Ho * Wo, kd * kh * kw * C), (N, Do, Ho, Wo)


def conv3d_bn(x, w, gamma, beta, mean, var, stride, padding, relu,
              residual=None, out_dtype=jnp.bfloat16):
    """x: (N,D,H,W,C) channels-last; w: PyTorch layout (Cout, Cin, kd, kh, kw).

    BatchNorm (inference) is folded into the weights/bias; residual add and
    ReLU are fused in the Pallas kernel epilogue.
    """
    Cout, Cin, kd, kh, kw = w.shape
    scale = gamma / jnp.sqrt(var + BN_EPS)
    shift = beta - mean * scale
    w_mat = jnp.transpose(w, (2, 3, 4, 1, 0)).reshape(kd * kh * kw * Cin, Cout)
    w_mat = w_mat * scale[None, :]  # fold BN scale into the weights

    if (kd, kh, kw) == (1, 1, 1) and padding == (0, 0, 0):
        # Pointwise conv: strided subsample, no im2col expansion.
        xs = x[:, ::stride[0], ::stride[1], ::stride[2], :]
        N_, Do, Ho, Wo, _ = xs.shape
        col = xs.reshape(N_ * Do * Ho * Wo, Cin)
    else:
        col, (N_, Do, Ho, Wo) = im2col_3d(x, (kd, kh, kw), stride, padding)

    res = None if residual is None else residual.reshape(-1, Cout)
    out = matmul_bias(col, w_mat, shift, residual=res, relu=relu,
                      out_dtype=out_dtype)
    return out.reshape(N_, Do, Ho, Wo, Cout)


# ---------------------------------------------------------------------------
# Bottleneck parameters (matches Bottleneck.__init__; downsample, when present,
# is the canonical conv1x1x1(in_planes, planes*4, stride) + BatchNorm3d).
# ---------------------------------------------------------------------------
EXPANSION = 4


def init_bottleneck_params(key, in_planes, planes, stride=1,
                           with_downsample=None):
    if with_downsample is None:
        with_downsample = (stride != 1 or in_planes != planes * EXPANSION)
    keys = iter(jax.random.split(key, 8))

    def conv_w(cout, cin, k):
        fan_out = cout * k[0] * k[1] * k[2]
        std = math.sqrt(2.0 / fan_out)
        return jax.random.normal(next(keys), (cout, cin, *k),
                                 jnp.float32) * std

    def bn(c):  # PyTorch BatchNorm3d init, inference (running) statistics
        return dict(gamma=jnp.ones((c,), jnp.float32),
                    beta=jnp.zeros((c,), jnp.float32),
                    mean=jnp.zeros((c,), jnp.float32),
                    var=jnp.ones((c,), jnp.float32))

    params = {
        "stride": stride,
        "conv1_w": conv_w(planes, in_planes, (1, 1, 1)),
        "bn1": bn(planes),
        "conv2_w": conv_w(planes, planes, (3, 3, 3)),
        "bn2": bn(planes),
        "conv3_w": conv_w(planes * EXPANSION, planes, (1, 1, 1)),
        "bn3": bn(planes * EXPANSION),
    }
    if with_downsample:
        params["ds_w"] = conv_w(planes * EXPANSION, in_planes, (1, 1, 1))
        params["ds_bn"] = bn(planes * EXPANSION)
    return params


# ---------------------------------------------------------------------------
# Bottleneck.forward
#   out = relu(bn1(conv1(x)))
#   out = relu(bn2(conv2(out)))          # conv2 carries the stride
#   out = bn3(conv3(out))
#   residual = downsample(x) or x
#   out = relu(out + residual)
# ---------------------------------------------------------------------------
def bottleneck_forward(params, x_ncdhw):
    x = jnp.transpose(x_ncdhw, (0, 2, 3, 4, 1)).astype(jnp.bfloat16)  # NDHWC
    s = params["stride"]

    out = conv3d_bn(x, params["conv1_w"], **params["bn1"],
                    stride=(1, 1, 1), padding=(0, 0, 0), relu=True)
    out = conv3d_bn(out, params["conv2_w"], **params["bn2"],
                    stride=(s, s, s), padding=(1, 1, 1), relu=True)

    if "ds_w" in params:
        residual = conv3d_bn(x, params["ds_w"], **params["ds_bn"],
                             stride=(s, s, s), padding=(0, 0, 0), relu=False)
    else:
        residual = x  # identity shortcut

    # conv3 + bn3 + residual add + final ReLU all fused in one Pallas call.
    out = conv3d_bn(out, params["conv3_w"], **params["bn3"],
                    stride=(1, 1, 1), padding=(0, 0, 0), relu=True,
                    residual=residual, out_dtype=jnp.float32)
    return jnp.transpose(out, (0, 4, 1, 2, 3))  # NDHWC -> NCDHW


# ---------------------------------------------------------------------------
if __name__ == "__main__":
    key = jax.random.PRNGKey(0)
    k1, k2, kx = jax.random.split(key, 3)

    in_planes, planes, stride = 16, 16, 2

    # Block 1: strided, with downsample shortcut (exercises both kernel
    # variants: no-residual matmuls + fused-residual matmul).
    params1 = init_bottleneck_params(k1, in_planes, planes, stride=stride)
    # Block 2: identity shortcut (in_planes == planes*expansion, stride 1).
    params2 = init_bottleneck_params(k2, planes * EXPANSION, planes, stride=1)

    # PyTorch NCDHW input: (batch=2, C=16, D=8, H=16, W=16).
    x = jax.random.normal(kx, (2, in_planes, 8, 16, 16), jnp.float32)

    y = bottleneck_forward(params1, x)      # (2, 64, 4, 8, 8)
    y = bottleneck_forward(params2, y)      # (2, 64, 4, 8, 8)
    jax.block_until_ready(y)

    assert y.shape == (2, planes * EXPANSION, 4, 8, 8), y.shape
    assert bool(jnp.all(jnp.isfinite(y)))
    print("KERNEL_OK")
</pallas_src>

<mosaic_0001>
module attributes {stable_mosaic.version = 11 : i64} {
  func.func @_mm_kernel_nores(%arg0: i32, %arg1: i32, %arg2: i32, %arg3: memref<256x128xbf16, #tpu.memory_space<vmem>>, %arg4: memref<128x128xbf16, #tpu.memory_space<vmem>>, %arg5: memref<1x128xf32, #tpu.memory_space<vmem>>, %arg6: memref<256x128xbf16, #tpu.memory_space<vmem>>, %arg7: memref<256x128xf32, #tpu.memory_space<vmem>>) attributes {dimension_semantics = [#tpu.dimension_semantics<parallel>, #tpu.dimension_semantics<parallel>, #tpu.dimension_semantics<arbitrary>], iteration_bounds = array<i64: 16, 1, 1>, scalar_prefetch = 0 : i64, scratch_operands = 1 : i64, tpu.core_type = #tpu.core_type<tc>, window_params = [{transform_indices = @transform_0, window_bounds = array<i64: 256, 128>}, {transform_indices = @transform_1, window_bounds = array<i64: 128, 128>}, {transform_indices = @transform_2, window_bounds = array<i64: 1, 128>}, {transform_indices = @transform_3, window_bounds = array<i64: 256, 128>}]} {
    %c0_i32 = arith.constant 0 : i32
    %0 = arith.cmpi eq, %arg2, %c0_i32 : i32
    %1 = arith.extui %0 : i1 to i32
    %c0_i32_0 = arith.constant 0 : i32
    %2 = arith.cmpi ne, %1, %c0_i32_0 : i32
    scf.if %2 {
      %cst_10 = arith.constant 0.000000e+00 : f32
      %12 = vector.broadcast %cst_10 : f32 to vector<256x128xf32>
      %c0_11 = arith.constant 0 : index
      %c0_12 = arith.constant 0 : index
      %13 = vector.load %arg7[%c0_11, %c0_12] : memref<256x128xf32, #tpu.memory_space<vmem>>, vector<256x128xf32>
      tpu.vector_store %arg7[%c0_11, %c0_12], %12 {strides = array<i32>} : memref<256x128xf32, #tpu.memory_space<vmem>>, vector<256x128xf32>,
    } else {
    }
    %c0 = arith.constant 0 : index
    %c0_1 = arith.constant 0 : index
    %3 = vector.load %arg7[%c0, %c0_1] : memref<256x128xf32, #tpu.memory_space<vmem>>, vector<256x128xf32>
    %c0_2 = arith.constant 0 : index
    %c0_3 = arith.constant 0 : index
    %4 = vector.load %arg3[%c0_2, %c0_3] : memref<256x128xbf16, #tpu.memory_space<vmem>>, vector<256x128xbf16>
    %c0_4 = arith.constant 0 : index
    %c0_5 = arith.constant 0 : index
    %5 = vector.load %arg4[%c0_4, %c0_5] : memref<128x128xbf16, #tpu.memory_space<vmem>>, vector<128x128xbf16>
    %cst = arith.constant dense<0.000000e+00> : vector<256x128xf32>
    %6 = tpu.matmul %4, %5, %cst {dimension_numbers = #tpu.dot_dimension_numbers<[1], [0], [0], [1], [0, 0, 1, 1], [], []>} : vector<256x128xbf16>, vector<128x128xbf16>, vector<256x128xf32> -> vector<256x128xf32>
    %7 = arith.addf %3, %6 : vector<256x128xf32>
    %c0_6 = arith.constant 0 : index
    %c0_7 = arith.constant 0 : index
    %8 = vector.load %arg7[%c0_6, %c0_7] : memref<256x128xf32, #tpu.memory_space<vmem>>, vector<256x128xf32>
    tpu.vector_store %arg7[%c0_6, %c0_7], %7 {strides = array<i32>} : memref<256x128xf32, #tpu.memory_space<vmem>>, vector<256x128xf32>,
    %c0_i32_8 = arith.constant 0 : i32
    %9 = arith.cmpi eq, %arg2, %c0_i32_8 : i32
    %10 = arith.extui %9 : i1 to i32
    %c0_i32_9 = arith.constant 0 : i32
    %11 = arith.cmpi ne, %10, %c0_i32_9 : i32
    scf.if %11 {
      %c0_10 = arith.constant 0 : index
      %c0_11 = arith.constant 0 : index
      %12 = vector.load %arg7[%c0_10, %c0_11] : memref<256x128xf32, #tpu.memory_space<vmem>>, vector<256x128xf32>
      %c0_12 = arith.constant 0 : index
      %c0_13 = arith.constant 0 : index
      %13 = vector.load %arg5[%c0_12, %c0_13] : memref<1x128xf32, #tpu.memory_space<vmem>>, vector<1x128xf32>
      %14 = vector.broadcast %13 : vector<1x128xf32> to vector<256x128xf32>
      %15 = arith.addf %12, %14 : vector<256x128xf32>
      %cst_14 = arith.constant 0.000000e+00 : f32
      %16 = vector.broadcast %cst_14 : f32 to vector<256x128xf32>
      %17 = arith.maximumf %15, %16 : vector<256x128xf32>
      %18 = arith.truncf %17 : vector<256x128xf32> to vector<256x128xbf16>
      %c0_15 = arith.constant 0 : index
      %c0_16 = arith.constant 0 : index
      %19 = vector.load %arg6[%c0_15, %c0_16] : memref<256x128xbf16, #tpu.memory_space<vmem>>, vector<256x128xbf16>
      tpu.vector_store %arg6[%c0_15, %c0_16], %18 {strides = array<i32>} : memref<256x128xbf16, #tpu.memory_space<vmem>>, vector<256x128xbf16>,
    } else {
    }
    return
  }
  func.func @transform_0(%arg0: i32, %arg1: i32, %arg2: i32) -> (i32, i32) {
    %c0_i32 = arith.constant 0 : i32
    return %arg0, %arg2 : i32, i32
  }
  func.func @transform_1(%arg0: i32, %arg1: i32, %arg2: i32) -> (i32, i32) {
    %c0_i32 = arith.constant 0 : i32
    return %arg2, %arg1 : i32, i32
  }
  func.func @transform_2(%arg0: i32, %arg1: i32, %arg2: i32) -> (i32, i32) {
    %c0_i32 = arith.constant 0 : i32
    %c0_i32_0 = arith.constant 0 : i32
    return %c0_i32, %arg1 : i32, i32
  }
  func.func @transform_3(%arg0: i32, %arg1: i32, %arg2: i32) -> (i32, i32) {
    %c0_i32 = arith.constant 0 : i32
    return %arg0, %arg1 : i32, i32
  }
}

</mosaic_0001>

<bundles_post_ra>
// kernel: tpu_custom_call.1
= control target key start
LH: loop header
LB: loop body
LE: loop exit
PB: predicated region body
PF: predicated region fallthrough
CT: control target
= control target key end

     0   :  { %8 = vsyncpa [#allocation4], 0  ;;  %s1960_s0 = inlined_call_operand.hbm [shape: bf16[4096,128], index: 0, kind: input, shape index: {}]   ;;  %s1961_s1 = inlined_call_operand.hbm [shape: bf16[128,128], index: 1, kind: input, shape index: {}]   ;;  %s1962_s2 = inlined_call_operand.vmem [shape: f32[1,128], index: 2, kind: input, shape index: {}]   ;;  %s1963_s3 = inlined_call_operand.hbm [shape: bf16[4096,128], index: 3, kind: output, shape index: {}]  }
   0x1   :  { %10 = vsyncpa [#allocation4 + $0x1], 0 }
   0x2   :  { %11 = vsyncpa [#allocation7], 0 }
   0x3   :  { %12 = vsyncpa [#allocation5], 0 }
   0x4   :  { %14 = vsyncpa [#allocation5 + $0x1], 0  ;;  %s1697_s12 = smov 0   ;;  %s1699_s13 = smov 0  }
   0x5   :  { %s1701_s14 = smov 0   ;;  %s1703_s15 = smov 0  }
   0x6   :  { %s1705_s16 = smov 0   ;;  %s1707_s17 = smov 0  }
   0x7 LB: > { %s1137_s18 = sadd.s32 4294967295, %s1668_s17   ;;  %s1138_s19 = sadd.s32 4294967294, %s1668_s17   ;;  %s1668_s17 = sphi %s1707_s17, %s20_s17   ;;  %s1664_s16 = sphi %s1705_s16, %s1984_s16   ;;  %s1660_s15 = sphi %s1703_s15, %s1983_s15   ;;  %s1656_s14 = sphi %s1701_s14, %s1982_s14   ;;  %s1652_s13 = sphi %s1699_s13, %s1981_s13   ;;  %s1648_s12 = sphi %s1697_s12, %s1980_s12  }
   0x8   : > { %p61_p0 = scmp.ne.s32.totalorder %s1652_s13, %s1648_s12  ;;  %p1731_p1 = scmp.eq.s32.totalorder %s1137_s18, 0 }
   0x9   : > { %p1735_p2 = scmp.eq.s32.totalorder %s1137_s18, 15  ;;  %p147_p3 = scmp.eq.s32.totalorder %s1138_s19, 15 }
   0xa   : > { %p1741_p4 = por %p1731_p1, %p61_p0  ;;  %p1139_p5 = scmp.ge.s32.totalorder %s1668_s17, 1 }
   0xb   : > { %p1746_p6 = por %p147_p3, %p61_p0  ;;  %p154_p7 = scmp.lt.s32.totalorder %s1668_s17, 17 }
   0xc   : > { %s1670_s25 = smov [#allocation6]   ;;  %s39_s28 = sadd.s32 1, %s1664_s16 }
   0xd   : > { %s1970_s23 = scalar_select %p1746_p6, 1, 0 }
   0xe   : > { %p1751_p8 = pnand %p1139_p5, %p154_p7  ;;  %s170_s26 = sshll.u32 %s1670_s25, 4  ;;  %s171_s26 = int_to_ptr.vmem [resolvable:$true] %s170_s26 }
   0xf   : > { %s1541_s29 = scalar_lea.vmem %s171_s26, 1024  ;;  %p1549_p3 = scmp.lt.s32.totalorder %s171_s26, %s171_s26 }
  0x10   : > { %p1437_p9 = pneg %p1751_p8  ;;  %p1542_p12 = scmp.ne.s32.totalorder %s171_s26, %s1541_s29 }
  0x11   : > { %p1550_p5 = scmp.lt.s32.totalorder %s1541_s29, %s1541_s29 }
  0x12   : > { %p1759_p10 = pnand %p1437_p9, %p1731_p1 }
  0x13   : > { %p1551_p7 = por %p1550_p5, %p1549_p3 }
  0x14   : > { %p1532_p11 = pneg %p1759_p10 }
  0x16   : > { %p1544_p13 = pnand %p1542_p12, %p1532_p11 }
  0x18   : > { %p1545_p0 = pneg %p1544_p13 }
  0x1a   : > { %p1552_p6 = pnand %p1551_p7, %p1545_p0 }
  0x1c   : > { %1555 = shalt.err (!%p1552_p6)
}
  0x1d   : > { %s1964_s30 = smov 64   ;;  %s1965_s4 = smov 4  }
  0x1e   : > { %1440 = dma.hbm_to_vmem [thread:$0]  (!%p1759_p10), %s1961_s1, 1024, %s171_s26, [#allocation7], %s1964_s30, %s1964_s30, %s1965_s4  }
  0x1f   : > { %p41_p6 = scmp.ge.s32.totalorder %s39_s28, 16  ;;  %s48_s7 = sadd.s32 1, %s1656_s14 }
  0x20   : > { %p55_p9 = scmp.ne.s32.totalorder %s1656_s14, %s1652_s13  ;;  %p56_p11 = scmp.eq.s32.totalorder %s1668_s17, 0 }
  0x21   : > { %s1986_s28 = smov (%p41_p6, %s39_s28), 0  ;;  %p1450_p0 = scmp.lt.s32.totalorder %s1668_s17, 16 }
  0x22   : > { %p1780_p12 = por %p56_p11, %p55_p9  ;;  %p1786_p13 = por %p1735_p2, %p55_p9 }
  0x23   : > { %s43_s10 = ssub.s32 %s1664_s16, %s1986_s28  ;;  %s190_s11 = sand.u32 1, %s1656_s14  }
  0x24   : > { %s1974_s9 = scalar_select %p1786_p13, 1, 0 }
  0x25   : > { %p46_p10 = scmp.eq.s32.totalorder %s43_s10, 0  ;;  %s1143_s18 = sshll.u32 %s190_s11, 7 }
  0x26   : > { %s1212_s25 = sshll.u32 %s1664_s16, 11  ;;  %s194_s5 = scalar_lea.vmem [#allocation3], %s1143_s18 }
  0x27   : > { %s1795_s19 = scalar_select %p46_p10, %s1656_s14, %s48_s7  }
  0x28   : > { %s201_s29 = scalar_lea.hbm %s1960_s0, %s1212_s25  ;;  %s202_s6 = sshll.u32 %s194_s5, 4  ;;  %s203_s6 = int_to_ptr.vmem [resolvable:$true] %s202_s6 }
  0x29   : > { %p1803_p2 = pnand %p1450_p0, %p1780_p12  ;;  %s191_s30 = scalar_lea.sflag [#allocation4], %s190_s11 }
  0x2a   : > { %s1569_s10 = scalar_lea.vmem %s203_s6, 2048  ;;  %s1673_s7 = smov [#allocation3]  }
  0x2b   : > { %p1558_p3 = pneg %p1803_p2  ;;  %p1570_p5 = scmp.ne.s32.totalorder %s203_s6, %s1569_s10 }
  0x2c   : > { %s1574_s4 = sshll.u32 %s1673_s7, 4  ;;  %s1575_s4 = int_to_ptr.vmem [resolvable:$false] %s1574_s4 }
  0x2d   : > { %p1572_p7 = pnand %p1570_p5, %p1558_p3  ;;  %s1576_s25 = scalar_lea.vmem %s1575_s4, 4096 }
  0x2e   : > { %p1577_p9 = scmp.lt.s32.totalorder %s203_s6, %s1575_s4  ;;  %p1578_p11 = scmp.lt.s32.totalorder %s1576_s25, %s1569_s10 }
  0x2f   : > { %p1573_p6 = pneg %p1572_p7 }
  0x30   : > { %p1579_p10 = por %p1578_p11, %p1577_p9 }
  0x32   : > { %p1580_p13 = pnand %p1579_p10, %p1573_p6 }
  0x34   : > { %1583 = shalt.err (!%p1580_p13)
}
  0x35   : > { %s1976_s8 = smov 4   ;;  %s1977_s18 = smov 64  }
  0x36   : > { %1444 = dma.hbm_to_vmem [thread:$0]  (!%p1803_p2), %s201_s29, 2048, %s203_s6, %s191_s30, %s1977_s18, %s1977_s18, %s1976_s8  }
  0x37   : > { %214 = sbr.rel (%p1751_p8) target bundleno = 339 (0x153), region = 32  ;;  %s1817_s11 = sand.u32 (!%p1751_p8), 1, %s1652_s13  }
  0x38   : > { %s1147_s4 = sshll.u32 (!%p1751_p8), %s1817_s11, 7  ;;  %s217_s26 = scalar_lea.sflag (!%p1751_p8), [#allocation4], %s1817_s11 }
  0x39   : > { %s1823_s27 = scalar_lea.vmem (!%p1751_p8), [#allocation3], %s1147_s4 }
  0x3c   : > { %1635 = dma.done.wait (%p1741_p4), %s217_s26, 2048  }
  0x3d   : > { %1637 = vsyncadd (%p1741_p4), %s217_s26, 4294965248 }
  0x3e   : > { %1639 = dma.done.wait (%p1731_p1), [#allocation7], 1024  }
  0x3f   : > { %1641 = vsyncadd (%p1731_p1), [#allocation7], 4294966272  ;;  %v1506_v0 = vld [vmem:[#allocation6 + $0x38] sm:$0xff]   ;;  %v1507_v1 = vld [vmem:[#allocation6 + $0x30] sm:$0xff]   ;;  %s1866_s24 = scalar_lea.vmem [#allocation8], %s1147_s4  ;;  %s1245_s30 = sshll.u32 %s1660_s15, 11 }
  0x40   : > { %1365 = vmatprep.subr.bf16.mxu0 %v1506_v0  ;;  %1413 = vmatprep.subr.bf16.mxu1 %v1506_v0  ;;  %v1508_v2 = vld [vmem:[#allocation6 + $0x28] sm:$0xff]   ;;  %v1509_v3 = vld [vmem:[#allocation6 + $0x20] sm:$0xff]   ;;  %v1510_v6 = vld [vmem:[#allocation6 + $0x18] sm:$0xff]   ;;  %s1023_s29 = sshll.u32 %s1866_s24, 4  ;;  %s1907_s21 = scalar_lea.hbm %s1963_s3, %s1245_s30  ;;  %s1909_s29 = int_to_ptr.vmem [resolvable:$true] %s1023_s29 }
  0x41   : > { %1366 = vmatpush3.bf16.msra.mxu0 %v1506_v0  ;;  %1421 = vmatpush3.bf16.msra.mxu1 %v1506_v0  ;;  %v1514_v4 = vld [vmem:[%s1823_s27] sm:$0xff]   ;;  %v1511_v7 = vld [vmem:[#allocation6 + $0x10] sm:$0xff]   ;;  %v1512_v8 = vld [vmem:[#allocation6 + $0x8] sm:$0xff]   ;;  %s1009_s15 = scalar_lea.sflag [#allocation5], %s1817_s11  ;;  %s1584_s10 = scalar_lea.vmem %s1909_s29, 2048 }
  0x42   : > { %1367 = vmatprep.subr.bf16.mxu0 %v1507_v1  ;;  %1414 = vmatprep.subr.bf16.mxu1 %v1507_v1  ;;  %v1515_v5 = vld [vmem:[%s1823_s27 + $0x40] sm:$0xff]   ;;  %v1516_v10 = vld [vmem:[%s1823_s27 + $0x8] sm:$0xff]   ;;  %v1518_v12 = vld [vmem:[%s1823_s27 + $0x10] sm:$0xff]   ;;  %p1585_p1 = scmp.ne.s32.totalorder %s1909_s29, %s1584_s10  ;;  %p1978_p4 = scmp.ne.s32.totalorder %s1974_s9, 0 }
  0x43   : > { %1381 = vmatprep.mubr.bf16.mxu0 %v1514_v4  ;;  %1397 = vmatprep.mubr.bf16.mxu1 %v1515_v5  ;;  %v1513_v9 = vld [vmem:[#allocation6] sm:$0xff]   ;;  %v1517_v11 = vld [vmem:[%s1823_s27 + $0x48] sm:$0xff]   ;;  %v1519_v13 = vld [vmem:[%s1823_s27 + $0x50] sm:$0xff]   ;;  %s1674_s7 = smov [#allocation8]  }
  0x44   : > { %v1520_v14 = vld [vmem:[%s1823_s27 + $0x18] sm:$0xff]   ;;  %v1522_v16 = vld [vmem:[%s1823_s27 + $0x20] sm:$0xff]   ;;  %v1524_v18 = vld [vmem:[%s1823_s27 + $0x28] sm:$0xff]   ;;  %p1586_p8 = pnand %p1585_p1, %p1978_p4  ;;  %s1588_s25 = sshll.u32 %s1674_s7, 4  ;;  %s1589_s25 = int_to_ptr.vmem [resolvable:$false] %s1588_s25 }
  0x45   : > { %1368 = vmatpush3.bf16.msra.mxu0 %v1507_v1  ;;  %1422 = vmatpush3.bf16.msra.mxu1 %v1507_v1  ;;  %v1521_v15 = vld [vmem:[%s1823_s27 + $0x58] sm:$0xff]   ;;  %v1523_v17 = vld [vmem:[%s1823_s27 + $0x60] sm:$0xff]   ;;  %v1525_v19 = vld [vmem:[%s1823_s27 + $0x68] sm:$0xff]   ;;  %s1590_s8 = scalar_lea.vmem %s1589_s25, 4096  ;;  %p1591_p13 = scmp.lt.s32.totalorder %s1909_s29, %s1589_s25 }
  0x46   : > { %1369 = vmatprep.subr.bf16.mxu0 %v1508_v2  ;;  %1415 = vmatprep.subr.bf16.mxu1 %v1508_v2  ;;  %v1526_v20 = vld [vmem:[%s1823_s27 + $0x30] sm:$0xff]   ;;  %v1528_v22 = vld [vmem:[%s1823_s27 + $0x38] sm:$0xff]   ;;  %v1852_v24 = vld [vmem:[%s1962_s2] ss:$0 sm:$0xff]  ;;  %p1587_p12 = pneg %p1586_p8  ;;  %p1592_p0 = scmp.lt.s32.totalorder %s1590_s8, %s1584_s10 }
  0x47   : > { %v1527_v21 = vld [vmem:[%s1823_s27 + $0x70] sm:$0xff]   ;;  %v1529_v23 = vld [vmem:[%s1823_s27 + $0x78] sm:$0xff]  }
  0x48   : > { %p1593_p2 = por %p1592_p0, %p1591_p13 }
  0x49   : > { %1370 = vmatpush3.bf16.msra.mxu0 %v1508_v2  ;;  %1423 = vmatpush3.bf16.msra.mxu1 %v1508_v2 }
  0x4a   : > { %1371 = vmatprep.subr.bf16.mxu0 %v1509_v3  ;;  %1416 = vmatprep.subr.bf16.mxu1 %v1509_v3  ;;  %p1594_p3 = pnand %p1593_p2, %p1587_p12 }
  0x4d   : > { %1372 = vmatpush3.bf16.msra.mxu0 %v1509_v3  ;;  %1424 = vmatpush3.bf16.msra.mxu1 %v1509_v3 }
  0x4e   : > { %1373 = vmatprep.subr.bf16.mxu0 %v1510_v6  ;;  %1417 = vmatprep.subr.bf16.mxu1 %v1510_v6 }
  0x51   : > { %1374 = vmatpush3.bf16.msra.mxu0 %v1510_v6  ;;  %1425 = vmatpush3.bf16.msra.mxu1 %v1510_v6 }
  0x52   : > { %1375 = vmatprep.subr.bf16.mxu0 %v1511_v7  ;;  %1418 = vmatprep.subr.bf16.mxu1 %v1511_v7 }
  0x55   : > { %1376 = vmatpush3.bf16.msra.mxu0 %v1511_v7  ;;  %1426 = vmatpush3.bf16.msra.mxu1 %v1511_v7 }
  0x56   : > { %1377 = vmatprep.subr.bf16.mxu0 %v1512_v8  ;;  %1419 = vmatprep.subr.bf16.mxu1 %v1512_v8 }
  0x59   : > { %1378 = vmatpush3.bf16.msra.mxu0 %v1512_v8  ;;  %1427 = vmatpush3.bf16.msra.mxu1 %v1512_v8 }
  0x5a   : > { %1379 = vmatprep.subr.bf16.mxu0 %v1513_v9  ;;  %1420 = vmatprep.subr.bf16.mxu1 %v1513_v9 }
  0x5d   : > { %1380 = vmatpush3.bf16.msra.mxu0 %v1513_v9  ;;  %1428 = vmatpush3.bf16.msra.mxu1 %v1513_v9 }
  0x60   : > { %1382 = vmatmul.mubr.bf16.vlgmr.msra.gmra.mxu0 %v1516_v10  ;;  %1398 = vmatmul.mubr.bf16.vlgmr.msra.gmra.mxu1 %v1517_v11 }
  0x61   : > { %1385 = vmatprep.mubr.bf16.mxu0 %v1518_v12  ;;  %1401 = vmatprep.mubr.bf16.mxu1 %v1519_v13 }
  0x68   : > { %1386 = vmatmul.mubr.bf16.gmra.mxu0 %v1520_v14  ;;  %1402 = vmatmul.mubr.bf16.gmra.mxu1 %v1521_v15 }
  0x69   : > { %1389 = vmatprep.mubr.bf16.mxu0 %v1522_v16  ;;  %1405 = vmatprep.mubr.bf16.mxu1 %v1523_v17 }
  0x70   : > { %1390 = vmatmul.mubr.bf16.gmra.mxu0 %v1524_v18  ;;  %1406 = vmatmul.mubr.bf16.gmra.mxu1 %v1525_v19 }
  0x71   : > { %1393 = vmatprep.mubr.bf16.mxu0 %v1526_v20  ;;  %1409 = vmatprep.mubr.bf16.mxu1 %v1527_v21 }
  0x78   : > { %1394 = vmatmul.mubr.bf16.gmra.mxu0 %v1528_v22  ;;  %1410 = vmatmul.mubr.bf16.gmra.mxu1 %v1529_v23 }
 0x120   : > { %v1383_v25 = vpop.f32.mrf.mxu0  ;;  %v1399_v26 = vpop.f32.mrf.mxu1 }
 0x121   : > { %v786_v27 = vadd.f32 %v1383_v25, %v1852_v24  ;;  %v802_v28 = vadd.f32 %v1399_v26, %v1852_v24 }
 0x122   : > { %v551_v29 = vpop.f32.mrf.mxu0  ;;  %v615_v30 = vpop.f32.mrf.mxu1 }
 0x123   : > { %v784_v31 = vadd.f32 %v1852_v24, %v551_v29  ;;  %v800_v32 = vadd.f32 %v1852_v24, %v615_v30  ;;  %v818_v37 = vmax.f32 %v786_v27, 0.0  ;;  %v834_v38 = vmax.f32 %v802_v28, 0.0 }
 0x124   : > { %v1384_v33 = vpop.f32.mrf.mxu0  ;;  %v1400_v34 = vpop.f32.mrf.mxu1 }
 0x125   : > { %v787_v35 = vadd.f32 %v1384_v33, %v1852_v24  ;;  %v803_v36 = vadd.f32 %v1400_v34, %v1852_v24  ;;  %v816_v45 = vmax.f32 %v784_v31, 0.0  ;;  %v832_v46 = vmax.f32 %v800_v32, 0.0 }
 0x126   : > { %v554_v39 = vpop.f32.mrf.mxu0  ;;  %v618_v40 = vpop.f32.mrf.mxu1 }
 0x127   : > { %v819_v41 = vmax.f32 %v787_v35, 0.0  ;;  %v835_v42 = vmax.f32 %v803_v36, 0.0  ;;  %v785_v43 = vadd.f32 %v1852_v24, %v554_v39  ;;  %v801_v44 = vadd.f32 %v1852_v24, %v618_v40 }
 0x128   : > { %v1387_v47 = vpop.f32.mrf.mxu0  ;;  %v1403_v48 = vpop.f32.mrf.mxu1 }
 0x129   : > { %v1254_v49 = vpack.c.bf16 %v819_v41, %v818_v37  ;;  %v1294_v50 = vpack.c.bf16 %v835_v42, %v834_v38  ;;  %v817_v51 = vmax.f32 %v785_v43, 0.0  ;;  %v833_v52 = vmax.f32 %v801_v44, 0.0 }
 0x12a   : > { %v790_v53 = vadd.f32 %v1387_v47, %v1852_v24  ;;  %v806_v54 = vadd.f32 %v1403_v48, %v1852_v24  ;;  %v567_v55 = vpop.f32.mrf.mxu0  ;;  %v631_v56 = vpop.f32.mrf.mxu1 }
 0x12b   : > { %1326 = vst [vmem:[%s1866_s24 + $0x8] sm:$0xff] %v1254_v49   ;;  %1334 = vst [vmem:[%s1866_s24 + $0x48] sm:$0xff] %v1294_v50   ;;  %v1249_v57 = vpack.c.bf16 %v817_v51, %v816_v45  ;;  %v1289_v58 = vpack.c.bf16 %v833_v52, %v832_v46  ;;  %v788_v59 = vadd.f32 %v1852_v24, %v567_v55 }
 0x12c   : > { %v804_v60 = vadd.f32 %v1852_v24, %v631_v56  ;;  %v1388_v61 = vpop.f32.mrf.mxu0  ;;  %v1404_v62 = vpop.f32.mrf.mxu1  ;;  %v822_v1 = vmax.f32 %v790_v53, 0.0  ;;  %v838_v2 = vmax.f32 %v806_v54, 0.0 }
 0x12d   : > { %1250 = vst [vmem:[%s1866_s24] sm:$0xff] %v1249_v57   ;;  %1333 = vst [vmem:[%s1866_s24 + $0x40] sm:$0xff] %v1289_v58   ;;  %v791_v63 = vadd.f32 %v1388_v61, %v1852_v24  ;;  %v807_v0 = vadd.f32 %v1404_v62, %v1852_v24  ;;  %v820_v9 = vmax.f32 %v788_v59, 0.0 }
 0x12e   : > { %v570_v3 = vpop.f32.mrf.mxu0  ;;  %v634_v4 = vpop.f32.mrf.mxu1  ;;  %v836_v10 = vmax.f32 %v804_v60, 0.0 }
 0x12f   : > { %v823_v5 = vmax.f32 %v791_v63, 0.0  ;;  %v839_v6 = vmax.f32 %v807_v0, 0.0  ;;  %v789_v7 = vadd.f32 %v1852_v24, %v570_v3  ;;  %v805_v8 = vadd.f32 %v1852_v24, %v634_v4 }
 0x130   : > { %v1391_v11 = vpop.f32.mrf.mxu0  ;;  %v1407_v12 = vpop.f32.mrf.mxu1 }
 0x131   : > { %v1264_v13 = vpack.c.bf16 %v823_v5, %v822_v1  ;;  %v1304_v14 = vpack.c.bf16 %v839_v6, %v838_v2  ;;  %v821_v15 = vmax.f32 %v789_v7, 0.0  ;;  %v837_v16 = vmax.f32 %v805_v8, 0.0 }
 0x132   : > { %v794_v17 = vadd.f32 %v1391_v11, %v1852_v24  ;;  %v810_v18 = vadd.f32 %v1407_v12, %v1852_v24  ;;  %v583_v19 = vpop.f32.mrf.mxu0  ;;  %v647_v20 = vpop.f32.mrf.mxu1 }
 0x133   : > { %1328 = vst [vmem:[%s1866_s24 + $0x18] sm:$0xff] %v1264_v13   ;;  %1336 = vst [vmem:[%s1866_s24 + $0x58] sm:$0xff] %v1304_v14   ;;  %v1259_v21 = vpack.c.bf16 %v821_v15, %v820_v9  ;;  %v1299_v22 = vpack.c.bf16 %v837_v16, %v836_v10  ;;  %v792_v23 = vadd.f32 %v1852_v24, %v583_v19 }
 0x134   : > { %v808_v25 = vadd.f32 %v1852_v24, %v647_v20  ;;  %v1392_v26 = vpop.f32.mrf.mxu0  ;;  %v1408_v27 = vpop.f32.mrf.mxu1  ;;  %v826_v30 = vmax.f32 %v794_v17, 0.0  ;;  %v842_v31 = vmax.f32 %v810_v18, 0.0 }
 0x135   : > { %1327 = vst [vmem:[%s1866_s24 + $0x10] sm:$0xff] %v1259_v21   ;;  %1335 = vst [vmem:[%s1866_s24 + $0x50] sm:$0xff] %v1299_v22   ;;  %v795_v28 = vadd.f32 %v1392_v26, %v1852_v24  ;;  %v811_v29 = vadd.f32 %v1408_v27, %v1852_v24  ;;  %v824_v38 = vmax.f32 %v792_v23, 0.0 }
 0x136   : > { %v586_v32 = vpop.f32.mrf.mxu0  ;;  %v650_v33 = vpop.f32.mrf.mxu1  ;;  %v840_v39 = vmax.f32 %v808_v25, 0.0 }
 0x137   : > { %v827_v34 = vmax.f32 %v795_v28, 0.0  ;;  %v843_v35 = vmax.f32 %v811_v29, 0.0  ;;  %v793_v36 = vadd.f32 %v1852_v24, %v586_v32  ;;  %v809_v37 = vadd.f32 %v1852_v24, %v650_v33 }
 0x138   : > { %v1395_v40 = vpop.f32.mrf.mxu0  ;;  %v1411_v41 = vpop.f32.mrf.mxu1 }
 0x139   : > { %v1274_v42 = vpack.c.bf16 %v827_v34, %v826_v30  ;;  %v1314_v43 = vpack.c.bf16 %v843_v35, %v842_v31  ;;  %v825_v44 = vmax.f32 %v793_v36, 0.0  ;;  %v841_v45 = vmax.f32 %v809_v37, 0.0 }
 0x13a   : > { %v798_v46 = vadd.f32 %v1395_v40, %v1852_v24  ;;  %v814_v47 = vadd.f32 %v1411_v41, %v1852_v24  ;;  %v599_v48 = vpop.f32.mrf.mxu0  ;;  %v663_v49 = vpop.f32.mrf.mxu1 }
 0x13b   : > { %1330 = vst [vmem:[%s1866_s24 + $0x28] sm:$0xff] %v1274_v42   ;;  %1338 = vst [vmem:[%s1866_s24 + $0x68] sm:$0xff] %v1314_v43   ;;  %v1269_v50 = vpack.c.bf16 %v825_v44, %v824_v38  ;;  %v1309_v51 = vpack.c.bf16 %v841_v45, %v840_v39  ;;  %v796_v52 = vadd.f32 %v1852_v24, %v599_v48 }
 0x13c   : > { %v812_v53 = vadd.f32 %v1852_v24, %v663_v49  ;;  %v1396_v54 = vpop.f32.mrf.mxu0  ;;  %v1412_v55 = vpop.f32.mrf.mxu1  ;;  %v830_v58 = vmax.f32 %v798_v46, 0.0  ;;  %v846_v59 = vmax.f32 %v814_v47, 0.0 }
 0x13d   : > { %1329 = vst [vmem:[%s1866_s24 + $0x20] sm:$0xff] %v1269_v50   ;;  %1337 = vst [vmem:[%s1866_s24 + $0x60] sm:$0xff] %v1309_v51   ;;  %v799_v56 = vadd.f32 %v1396_v54, %v1852_v24  ;;  %v815_v57 = vadd.f32 %v1412_v55, %v1852_v24  ;;  %v828_v2 = vmax.f32 %v796_v52, 0.0 }
 0x13e   : > { %v602_v60 = vpop.f32.mrf.mxu0  ;;  %v666_v61 = vpop.f32.mrf.mxu1  ;;  %v844_v3 = vmax.f32 %v812_v53, 0.0 }
 0x13f   : > { %v831_v62 = vmax.f32 %v799_v56, 0.0  ;;  %v847_v63 = vmax.f32 %v815_v57, 0.0  ;;  %v797_v0 = vadd.f32 %v1852_v24, %v602_v60  ;;  %v813_v1 = vadd.f32 %v1852_v24, %v666_v61 }
 0x141   : > { %v1284_v4 = vpack.c.bf16 %v831_v62, %v830_v58  ;;  %v1324_v5 = vpack.c.bf16 %v847_v63, %v846_v59  ;;  %v829_v6 = vmax.f32 %v797_v0, 0.0  ;;  %v845_v7 = vmax.f32 %v813_v1, 0.0 }
 0x143   : > { %1332 = vst [vmem:[%s1866_s24 + $0x38] sm:$0xff] %v1284_v4   ;;  %1340 = vst [vmem:[%s1866_s24 + $0x78] sm:$0xff] %v1324_v5   ;;  %v1279_v24 = vpack.c.bf16 %v829_v6, %v828_v2  ;;  %v1319_v8 = vpack.c.bf16 %v845_v7, %v844_v3 }
 0x145   : > { %1331 = vst [vmem:[%s1866_s24 + $0x30] sm:$0xff] %v1279_v24   ;;  %1339 = vst [vmem:[%s1866_s24 + $0x70] sm:$0xff] %v1319_v8  }
 0x146   : > { %1597 = shalt.err (!%p1594_p3)
}
 0x147   : > { %s1598_s18 = scalar_lea.hbm %s1907_s21, 2048  ;;  %s1602_s27 = scalar_lea.hbm %s1963_s3, 32768 }
 0x148   : > { %p1599_p5 = scmp.ne.s32.totalorder %s1907_s21, %s1598_s18  ;;  %p1603_p9 = scmp.lt.s32.totalorder %s1907_s21, %s1963_s3 }
 0x149   : > { %p1604_p11 = scmp.lt.s32.totalorder %s1602_s27, %s1598_s18 }
 0x14a   : > { %p1600_p7 = pnand %p1599_p5, %p1978_p4 }
 0x14b   : > { %p1605_p10 = por %p1604_p11, %p1603_p9 }
 0x14c   : > { %p1601_p6 = pneg %p1600_p7 }
 0x14e   : > { %p1606_p1 = pnand %p1605_p10, %p1601_p6 }
 0x150   : > { %1609 = shalt.err (!%p1606_p1)
}
 0x151   : > { %s1675_s24 = smov 64   ;;  %s1676_s30 = smov 4  }
 0x152   : > { %1435 = dma.vmem_to_hbm [thread:$0]  (%p1978_p4), %s1909_s29, 2048, %s1907_s21, %s1009_s15, %s1675_s24, %s1675_s24, %s1676_s30  }
 0x153 PF: > { %p1452_p8 = scmp.ge.s32.totalorder %s1668_s17, 2  ;;  %s1038_s5 = sand.u32 1, %s1648_s12  }
 0x154   : > { %p1979_p12 = scmp.ne.s32.totalorder %s1970_s23, 0  ;;  %s1039_s6 = scalar_lea.sflag [#allocation5], %s1038_s5 }
 0x156   : > { %p1446_p13 = pnand %p1452_p8, %p1979_p12 }
 0x158   : > { %p1447_p0 = pneg %p1446_p13 }
 0x15a   : > { %1643 = dma.done.wait (%p1447_p0), %s1039_s6, 2048  }
 0x15b   : > { %1645 = vsyncadd (%p1447_p0), %s1039_s6, 4294965248  ;;  %s20_s17 = sadd.s32 1, %s1668_s17   ;;  %s1980_s12 = smov %s1652_s13 }
 0x15c   : > { %p17_p2 = scmp.ge.s32.totalorder %s20_s17, 18   ;;  %s1981_s13 = smov %s1656_s14 }
 0x15d   : > { %s1982_s14 = smov %s1795_s19  ;;  %s1983_s15 = smov %s1664_s16 }
 0x15e   : > { %s1984_s16 = smov %s1986_s28  ;;  %19 = sbr.rel (!%p17_p2) target bundleno = 7 (0x7), region = 93 }
 0x163   :  { %1044 = vsyncpa [#allocation4], 1 }
 0x164   :  { %1046 = vsyncpa [#allocation4 + $0x1], 1 }
 0x165   :  { %1047 = vsyncpa [#allocation7], 1 }
 0x166   :  { %1048 = vsyncpa [#allocation5], 1 }
 0x167   :  { %1050 = vsyncpa [#allocation5 + $0x1], 1 }

</bundles_post_ra>
